<compile_context>
chip_gen: v7x
topology: tpu7x:2x2x1
jax: 0.10.0
libtpu: 0.0.40
codegen_flags: <defaults>
</compile_context>

<pallas_src>
import jax
import jax.numpy as jnp
from jax.experimental import pallas as pl
from jax.experimental.pallas import tpu as pltpu


def _build_encoding(max_len: int, d_model: int) -> jnp.ndarray:
    """Replicates PositionalEncoding.__init__ sinusoid table (float32)."""
    pos = jnp.arange(0, max_len, dtype=jnp.float32)[:, None]            # [max_len, 1]
    _2i = jnp.arange(0, d_model, 2, dtype=jnp.float32)                  # [ceil(d/2)]
    angle = pos / jnp.power(10000.0, _2i / float(d_model))              # [max_len, ceil(d/2)]
    enc = jnp.zeros((max_len, d_model), dtype=jnp.float32)
    enc = enc.at[:, 0::2].set(jnp.sin(angle))
    enc = enc.at[:, 1::2].set(jnp.cos(angle[:, : d_model // 2]))        # odd-D safe
    return enc


def _pe_add_kernel(x_ref, enc_ref, o_ref):
    # x_ref: (TB, TF); enc_ref: (1, TF).  Broadcast-add over the batch (sublane) axis.
    # jnp promotion keeps the add in f32 when enc is f32 and x is lower precision
    # (matches torch semantics); the store casts to the output dtype.
    o_ref[...] = (x_ref[...] + enc_ref[...]).astype(o_ref.dtype)


def _pick_tiles(b: int, flat: int, itemsize: int, target_bytes: int):
    """Pick (batch_tile, flat_tile): lane-dense 128-multiples, ~target_bytes per x tile."""
    # Full batch when small (block dim == full extent is always legal); otherwise 256
    # rows, a multiple of every sublane packing (8 f32 / 16 bf16 / 32 int8).
    tb = b if b <= 256 else 256
    if flat <= 128:
        return tb, flat                     # full flat extent (legal even if < 128)
    tf = max(128, (target_bytes // max(1, tb * itemsize)) // 128 * 128)
    tf = min(tf, flat)
    if tf < flat and flat % tf != 0:
        # Prefer a 128-multiple that divides `flat` so the last tile is not ragged.
        cand = tf
        while cand >= 128:
            if flat % cand == 0:
                return tb, cand
            cand -= 128
        # No lane-dense divisor exists: keep the ragged tail (edge blocks are masked).
    return tb, tf


def positional_encoding_forward(x: jnp.ndarray, encoding: jnp.ndarray, *,
                                target_bytes: int = 4 * 1024 * 1024,
                                donate_x: bool = False) -> jnp.ndarray:
    """x: [B, S, D]; encoding: [max_len, D].  Returns x + encoding[:S, :] in x.dtype."""
    b, s, d = x.shape
    max_len, d_enc = encoding.shape
    assert d_enc == d, "encoding d_model mismatch"
    assert max_len >= s, "sequence longer than positional-encoding table"

    flat = s * d
    # Row-major collapse: free bitcast under jit.  The first S*D elements of the
    # flattened table are exactly encoding[:S, :].ravel(), so no slice/cast needed.
    x2 = x.reshape(b, flat)
    enc2 = encoding.reshape(1, max_len * d)

    x_itemsize = jnp.dtype(x.dtype).itemsize
    enc_itemsize = jnp.dtype(encoding.dtype).itemsize
    tb, tf = _pick_tiles(b, flat, x_itemsize, target_bytes)

    num_f_tiles = pl.cdiv(flat, tf)
    num_b_tiles = pl.cdiv(b, tb)

    # Explicit scoped-VMEM budget: double-buffered x, out and enc tiles + headroom.
    x_tile_bytes = tb * tf * x_itemsize
    enc_tile_bytes = tf * enc_itemsize
    vmem_limit = int(2 * (2 * x_tile_bytes + enc_tile_bytes) + (4 << 20))

    extra = {}
    if donate_x:
        # Write the sum back into x's HBM buffer (only if the caller can donate x).
        extra["input_output_aliases"] = {0: 0}

    out2 = pl.pallas_call(
        _pe_add_kernel,
        out_shape=jax.ShapeDtypeStruct((b, flat), x.dtype),
        grid_spec=pltpu.PrefetchScalarGridSpec(
            num_scalar_prefetch=0,
            # batch tile innermost (fastest varying): enc block index (0, j) stays
            # constant across the inner loop -> enc tile stays resident, no re-DMA.
            grid=(num_f_tiles, num_b_tiles),
            in_specs=[
                pl.BlockSpec((tb, tf), lambda j, i: (i, j)),    # x flat tile
                pl.BlockSpec((1, tf), lambda j, i: (0, j)),     # enc flat tile (reused)
            ],
            out_specs=pl.BlockSpec((tb, tf), lambda j, i: (i, j)),
        ),
        compiler_params=pltpu.CompilerParams(
            dimension_semantics=("parallel", "parallel"),
            vmem_limit_bytes=vmem_limit,
        ),
        **extra,
    )(x2, enc2)

    return out2.reshape(b, s, d)


if __name__ == "__main__":
    key = jax.random.PRNGKey(0)

    # Shapes implied by the module: batch-first [B, S, D], table [max_len, D].
    batch, seq_len, d_model, max_len = 2, 8, 32, 16
    x = jax.random.normal(key, (batch, seq_len, d_model), dtype=jnp.float32)
    encoding = _build_encoding(max_len, d_model)

    fwd = jax.jit(positional_encoding_forward)
    out = jax.block_until_ready(fwd(x, encoding))

    ref = x + encoding[:seq_len, :]
    assert out.shape == (batch, seq_len, d_model)
    assert jnp.allclose(out, ref, atol=1e-6), "mismatch vs reference (main case)"

    # Extra coverage: multi-tile grid (tiny target to force tiling) where S*D is a
    # multiple of 128, and a ragged case where no 128-multiple divides S*D.
    k1, k2 = jax.random.split(key)

    x1 = jax.random.normal(k1, (2, 24, 96), dtype=jnp.float32)        # flat = 2304 = 18*128
    e1 = _build_encoding(32, 96)
    o1 = jax.block_until_ready(positional_encoding_forward(x1, e1, target_bytes=1024))
    assert jnp.allclose(o1, x1 + e1[:24, :], atol=1e-6), "mismatch (multi-tile case)"

    x2 = jax.random.normal(k2, (3, 9, 100), dtype=jnp.float32)        # flat = 900 (ragged)
    e2 = _build_encoding(16, 100)
    o2 = jax.block_until_ready(positional_encoding_forward(x2, e2, target_bytes=1024))
    assert jnp.allclose(o2, x2 + e2[:9, :], atol=1e-6), "mismatch (ragged-tail case)"

    print("KERNEL_OK")
</pallas_src>

<mosaic_0001>
module attributes {stable_mosaic.version = 11 : i64} {
  func.func @_pe_add_kernel(%arg0: i32, %arg1: i32, %arg2: memref<2x256xf32, #tpu.memory_space<vmem>>, %arg3: memref<1x256xf32, #tpu.memory_space<vmem>>, %arg4: memref<2x256xf32, #tpu.memory_space<vmem>>) attributes {dimension_semantics = [#tpu.dimension_semantics<parallel>, #tpu.dimension_semantics<parallel>], iteration_bounds = array<i64: 1, 1>, scalar_prefetch = 0 : i64, scratch_operands = 0 : i64, tpu.core_type = #tpu.core_type<tc>, window_params = [{transform_indices = @transform_0, window_bounds = array<i64: 2, 256>}, {transform_indices = @transform_1, window_bounds = array<i64: 1, 256>}, {transform_indices = @transform_2, window_bounds = array<i64: 2, 256>}]} {
    %c0 = arith.constant 0 : index
    %c0_0 = arith.constant 0 : index
    %0 = vector.load %arg2[%c0, %c0_0] : memref<2x256xf32, #tpu.memory_space<vmem>>, vector<2x256xf32>
    %c0_1 = arith.constant 0 : index
    %c0_2 = arith.constant 0 : index
    %1 = vector.load %arg3[%c0_1, %c0_2] : memref<1x256xf32, #tpu.memory_space<vmem>>, vector<1x256xf32>
    %2 = vector.broadcast %1 : vector<1x256xf32> to vector<2x256xf32>
    %3 = arith.addf %0, %2 : vector<2x256xf32>
    %c0_3 = arith.constant 0 : index
    %c0_4 = arith.constant 0 : index
    %4 = vector.load %arg4[%c0_3, %c0_4] : memref<2x256xf32, #tpu.memory_space<vmem>>, vector<2x256xf32>
    tpu.vector_store %arg4[%c0_3, %c0_4], %3 {strides = array<i32>} : memref<2x256xf32, #tpu.memory_space<vmem>>, vector<2x256xf32>,
    return
  }
  func.func @transform_0(%arg0: i32, %arg1: i32) -> (i32, i32) {
    %c0_i32 = arith.constant 0 : i32
    return %arg1, %arg0 : i32, i32
  }
  func.func @transform_1(%arg0: i32, %arg1: i32) -> (i32, i32) {
    %c0_i32 = arith.constant 0 : i32
    %c0_i32_0 = arith.constant 0 : i32
    return %c0_i32, %arg0 : i32, i32
  }
  func.func @transform_2(%arg0: i32, %arg1: i32) -> (i32, i32) {
    %c0_i32 = arith.constant 0 : i32
    return %arg1, %arg0 : i32, i32
  }
}

</mosaic_0001>

<bundles_post_ra>
// kernel: positional_encoding_forward.1
= control target key start
LH: loop header
LB: loop body
LE: loop exit
PB: predicated region body
PF: predicated region fallthrough
CT: control target
= control target key end

     0   :  { %v14_v0 = vlaneseq  ;;  %v38_v1 = vmov 1983009808   ;;  %s63_s1 = inlined_call_operand.vmem [shape: f32[1,512], index: 1, kind: input, shape index: {}]   ;;  %s64_s0 = inlined_call_operand.vmem [shape: f32[2,256], index: 0, kind: input, shape index: {}]   ;;  %s65_s2 = inlined_call_operand.vmem [shape: f32[2,256], index: 2, kind: output, shape index: {}]  }
   0x1   :  { %v24_v2 = vunpack.c.l.s4 %v38_v1  ;;  %v12_v4 = vld [vmem:[%s63_s1] sm:$0x3] }
   0x2   :  { %v15_v3 = vshrl.u32 %v14_v0, 7  ;;  %v11_v12 = vld [vmem:[%s64_s0] sm:$0xf] }
   0x3   :  { %v25_v5 = vunpack.c.0.s8 %v24_v2 }
   0x4   :  { %v16_v6 = vsub.s32 0, %v15_v3  ;;  %v20_v7 = vsub.s32 1, %v15_v3 }
   0x5   :  { %v28_v10 = vsub.s32 %v25_v5, %v15_v3 }
   0x6   :  { %v17_v8 = vrot.slane %v12_v4, %v16_v6  ;;  %v21_v9 = vrot.slane %v12_v4, %v20_v7 }
   0x8   :  { %v22_v11 = vcombine.low %v17_v8, %v21_v9 }
   0xa   :  { %v29_v13 = vrot.slane %v22_v11, %v28_v10 }
   0xc   :  { %v31_v14 = vadd.f32 %v29_v13, %v11_v12 }
   0xe   :  { %32 = vst [vmem:[%s65_s2] sm:$0xf] %v31_v14 }

</bundles_post_ra>
